<compile_context>
chip_gen: v6e
topology: v6e:2x2x1
jax: 0.10.0
libtpu: 0.0.40
codegen_flags: <defaults>
</compile_context>

<pallas_src>
import functools

import jax
import jax.numpy as jnp
import numpy as np
from jax.experimental import pallas as pl
from jax.experimental.pallas import tpu as pltpu


def _spatial_attention_kernel(x_ref, w1d_ref, b1d_ref, s2d_ref, b2_ref,
                              bcast_ref, att_ref, wgt_ref, *, L, F):
    LF = L * F
    x = x_ref[...]                                   # (tile, L*F), input dtype
    xf = x.astype(jnp.float32)

    # ---- Linear(F->H) + Tanh, lane-dense -----------------------------------
    # w1d is the (L*F, L*H) block-diagonal embedding of W1^T: one dense bf16
    # MXU matmul computes all L per-landmark Linear layers at once.
    h = jnp.tanh(
        jnp.dot(x.astype(jnp.bfloat16), w1d_ref[...],
                preferred_element_type=jnp.float32) + b1d_ref[...])  # (tile, L*H) f32

    # ---- Linear(H->1): w2 folded into a (L*H, L) segment-reduce matrix -----
    scores = jnp.dot(h.astype(jnp.bfloat16), s2d_ref[...],
                     preferred_element_type=jnp.float32) + b2_ref[0, 0]  # (tile, L)

    # ---- Softmax over landmarks (exact division: weights are user-visible) --
    m = jnp.max(scores, axis=-1, keepdims=True)
    e = jnp.exp(scores - m)
    w = e / jnp.sum(e, axis=-1, keepdims=True)       # (tile, L) f32
    wgt_ref[...] = w.astype(wgt_ref.dtype)

    # ---- attended[n,f] = sum_l w[n,l] * x[n,l,f] ----------------------------
    # Broadcast each landmark weight across its F-lane segment via an exact
    # 0/1 selector matmul, multiply with x in f32, fold the L segments.
    w_exp = jnp.dot(w.astype(jnp.bfloat16), bcast_ref[...],
                    preferred_element_type=jnp.float32)   # (tile, L*F)
    prod = w_exp * xf                                     # (tile, L*F)

    # Sum whole 128-lane tiles first (free vreg selects + VPU adds) ...
    a = prod[:, 0:128]
    for t in range(1, LF // 128):
        a = a + prod[:, t * 128:(t + 1) * 128]            # (tile, 128)
    # ... then fold the F-wide segments inside a lane tile with cyclic rolls
    # (XLU slot); lanes [0, F) hold the full landmark sum.
    acc = a
    for s in range(F, 128, F):
        acc = acc + pltpu.roll(a, s, axis=1)
    att_ref[...] = acc[:, :F].astype(att_ref.dtype)


def _round_up(n, m):
    return ((n + m - 1) // m) * m


@functools.partial(jax.jit, static_argnames=("tile_n",))
def spatial_attention(x, w1, b1, w2, b2, *, tile_n=2048):
    """x: (B, S, L, F).  Returns (attended (B,S,F), weights (B,S,L))."""
    B, S, L, F = x.shape
    H = w1.shape[0]
    N = B * S
    LF, LH = L * F, L * H

    if 128 % F != 0 or LF % 128 != 0 or w1.shape[1] != F:
        # TODO(synk): generalize the lane packing to feature dims that do not
        # divide 128 (would need per-landmark lane padding).
        raise ValueError(f"unsupported dims for lane packing: L={L}, F={F}")

    # ---- tile selection (multiple of 8; >=2 blocks when multi-block so both
    # v7x TensorCores get work under dimension_semantics=('parallel',)) ------
    N8 = _round_up(N, 8)
    tile = min(_round_up(tile_n, 8), N8)
    if N8 > tile:
        tile = min(tile, _round_up(pl.cdiv(N8, 2), 8))
    tile = max(tile, 8)
    n_blocks = pl.cdiv(N, tile)
    Npad = n_blocks * tile

    # ---- lane-dense x view (free reshape of contiguous minor dims in HBM) --
    x_flat = x.reshape(N, LF)
    if Npad != N:
        x_flat = jnp.pad(x_flat, ((0, Npad - N), (0, 0)))   # padded rows sliced off

    # ---- small constant operands (built once) -------------------------------
    eye_l = jnp.eye(L, dtype=jnp.float32)
    w1d = jnp.kron(eye_l, w1.T.astype(jnp.float32)).astype(jnp.bfloat16)   # (LF, LH)
    b1d = jnp.tile(b1.astype(jnp.float32), L).reshape(1, LH)               # (1, LH)
    s2d = jnp.kron(eye_l, w2.T.astype(jnp.float32)).astype(jnp.bfloat16)   # (LH, L)
    bcast = jnp.kron(eye_l, jnp.ones((1, F), jnp.float32)).astype(jnp.bfloat16)  # (L, LF)
    b2_2d = b2.reshape(1, 1).astype(jnp.float32)

    itemsize = x.dtype.itemsize
    x_block = tile * LF * itemsize
    out_block = tile * (F + L) * itemsize
    const_bytes = (LF * LH + LH * L + L * LF) * 2 + (LH + 1) * 4
    # double-buffered I/O + f32 intermediates (h, w_exp, prod, bf16 copies) +
    # headroom; capped at 48 MiB so compiler scratch still fits v7x's 64 MiB.
    vmem_limit = int(min(
        48 * 1024 * 1024,
        max(16 * 1024 * 1024,
            2 * x_block + 2 * out_block + 2 * const_bytes
            + 5 * tile * LF * 4 + 4 * 1024 * 1024)))

    cost = pl.CostEstimate(
        flops=(2 * Npad * LF * LH          # block-diag Linear1
               + 2 * Npad * LH * L         # scores matmul
               + 2 * Npad * L * LF         # weight broadcast matmul
               + 4 * Npad * LF             # multiply + folds
               + 6 * Npad * L),            # softmax
        transcendentals=Npad * LH + Npad * L,             # tanh, exp
        bytes_accessed=(Npad * LF * itemsize + Npad * (F + L) * itemsize
                        + const_bytes),
    )

    kernel = functools.partial(_spatial_attention_kernel, L=L, F=F)

    attended, weights = pl.pallas_call(
        kernel,
        out_shape=(
            jax.ShapeDtypeStruct((Npad, F), x.dtype),
            jax.ShapeDtypeStruct((Npad, L), x.dtype),
        ),
        grid=(n_blocks,),
        in_specs=[
            pl.BlockSpec((tile, LF), lambda i: (i, 0)),   # x tile (lane-dense)
            pl.BlockSpec((LF, LH), lambda i: (0, 0)),     # block-diag W1^T
            pl.BlockSpec((1, LH), lambda i: (0, 0)),      # tiled b1
            pl.BlockSpec((LH, L), lambda i: (0, 0)),      # w2 segment-reduce
            pl.BlockSpec((1, 1), lambda i: (0, 0)),       # b2
            pl.BlockSpec((L, LF), lambda i: (0, 0)),      # 0/1 broadcast selector
        ],
        out_specs=(
            pl.BlockSpec((tile, F), lambda i: (i, 0)),    # attended
            pl.BlockSpec((tile, L), lambda i: (i, 0)),    # attention weights
        ),
        compiler_params=pltpu.CompilerParams(
            dimension_semantics=("parallel",),
            vmem_limit_bytes=vmem_limit,
        ),
        cost_estimate=cost,
    )(x_flat, w1d, b1d, s2d, b2_2d, bcast)

    return attended[:N].reshape(B, S, F), weights[:N].reshape(B, S, L)


def _reference(x, w1, b1, w2, b2):
    """Plain-JAX f32 reference matching the PyTorch forward exactly."""
    B, S, L, F = x.shape
    xr = x.reshape(B * S, L, F).astype(jnp.float32)
    h = jnp.tanh(jnp.einsum("nlf,hf->nlh", xr, w1.astype(jnp.float32)) + b1)
    scores = jnp.einsum("nlh,kh->nlk", h, w2.astype(jnp.float32)) + b2   # (N, L, 1)
    w = jax.nn.softmax(scores, axis=1)
    attended = jnp.einsum("nlk,nlf->nkf", w, xr)                         # bmm(w^T, x)
    return attended.reshape(B, S, F), w.reshape(B, S, L)


if __name__ == "__main__":
    # Small shapes consistent with the module's forward:
    B, S, L = 2, 8, 16          # batch, seq_len, num_landmarks
    input_dim, hidden_dim = 32, 32

    key = jax.random.PRNGKey(0)
    kx, kw1, kb1, kw2, kb2 = jax.random.split(key, 5)

    x = jax.random.normal(kx, (B, S, L, input_dim), dtype=jnp.float32)

    # nn.Linear-style init (W is (out, in)).
    bound1 = 1.0 / np.sqrt(input_dim)
    bound2 = 1.0 / np.sqrt(hidden_dim)
    w1 = jax.random.uniform(kw1, (hidden_dim, input_dim), jnp.float32, -bound1, bound1)
    b1 = jax.random.uniform(kb1, (hidden_dim,), jnp.float32, -bound1, bound1)
    w2 = jax.random.uniform(kw2, (1, hidden_dim), jnp.float32, -bound2, bound2)
    b2 = jax.random.uniform(kb2, (1,), jnp.float32, -bound2, bound2)

    # Tolerance reflects bf16 MXU operands with f32 accumulation.
    RTOL = ATOL = 2e-2

    # Config 1: tiny input (single grid block, tile clamped to N).
    attended, weights = spatial_attention(x, w1, b1, w2, b2)
    attended = jax.block_until_ready(attended)
    weights = jax.block_until_ready(weights)

    ref_att, ref_w = _reference(x, w1, b1, w2, b2)
    np.testing.assert_allclose(np.asarray(attended), np.asarray(ref_att),
                               rtol=RTOL, atol=ATOL)
    np.testing.assert_allclose(np.asarray(weights), np.asarray(ref_w),
                               rtol=RTOL, atol=ATOL)
    assert attended.shape == (B, S, input_dim)
    assert weights.shape == (B, S, L)
    # Weights must still sum to ~1 (exact-division softmax).
    np.testing.assert_allclose(np.asarray(weights).sum(-1), 1.0, rtol=5e-3, atol=5e-3)

    # Config 2: multi-block grid + tail padding (N=400, tile=128 -> 4 blocks).
    B2, S2 = 5, 80
    x_big = jax.random.normal(jax.random.PRNGKey(1), (B2, S2, L, input_dim),
                              dtype=jnp.float32)
    att_big, wgt_big = spatial_attention(x_big, w1, b1, w2, b2, tile_n=128)
    att_big = jax.block_until_ready(att_big)
    wgt_big = jax.block_until_ready(wgt_big)

    ref_att_big, ref_w_big = _reference(x_big, w1, b1, w2, b2)
    np.testing.assert_allclose(np.asarray(att_big), np.asarray(ref_att_big),
                               rtol=RTOL, atol=ATOL)
    np.testing.assert_allclose(np.asarray(wgt_big), np.asarray(ref_w_big),
                               rtol=RTOL, atol=ATOL)
    assert att_big.shape == (B2, S2, input_dim)
    assert wgt_big.shape == (B2, S2, L)

    print("KERNEL_OK")
</pallas_src>

<mosaic_0001>
module attributes {stable_mosaic.version = 11 : i64} {
  func.func @_spatial_attention_kernel(%arg0: i32, %arg1: memref<16x512xf32, #tpu.memory_space<vmem>>, %arg2: memref<512x512xbf16, #tpu.memory_space<vmem>>, %arg3: memref<1x512xf32, #tpu.memory_space<vmem>>, %arg4: memref<512x16xbf16, #tpu.memory_space<vmem>>, %arg5: memref<1x1xf32, #tpu.memory_space<vmem>>, %arg6: memref<16x512xbf16, #tpu.memory_space<vmem>>, %arg7: memref<16x32xf32, #tpu.memory_space<vmem>>, %arg8: memref<16x16xf32, #tpu.memory_space<vmem>>) attributes {dimension_semantics = [#tpu.dimension_semantics<parallel>], iteration_bounds = array<i64: 1>, scalar_prefetch = 0 : i64, scratch_operands = 0 : i64, tpu.core_type = #tpu.core_type<tc>, window_params = [{transform_indices = @transform_0, window_bounds = array<i64: 16, 512>}, {pipeline_mode = #tpu.pipeline_mode<synchronous>, transform_indices = @transform_1, window_bounds = array<i64: 512, 512>}, {pipeline_mode = #tpu.pipeline_mode<synchronous>, transform_indices = @transform_2, window_bounds = array<i64: 1, 512>}, {pipeline_mode = #tpu.pipeline_mode<synchronous>, transform_indices = @transform_3, window_bounds = array<i64: 512, 16>}, {pipeline_mode = #tpu.pipeline_mode<synchronous>, transform_indices = @transform_4, window_bounds = array<i64: 1, 1>}, {pipeline_mode = #tpu.pipeline_mode<synchronous>, transform_indices = @transform_5, window_bounds = array<i64: 16, 512>}, {transform_indices = @transform_6, window_bounds = array<i64: 16, 32>}, {transform_indices = @transform_7, window_bounds = array<i64: 16, 16>}]} {
    %c0 = arith.constant 0 : index
    %c0_0 = arith.constant 0 : index
    %0 = vector.load %arg1[%c0, %c0_0] : memref<16x512xf32, #tpu.memory_space<vmem>>, vector<16x512xf32>
    %1 = arith.truncf %0 : vector<16x512xf32> to vector<16x512xbf16>
    %c0_1 = arith.constant 0 : index
    %c0_2 = arith.constant 0 : index
    %2 = vector.load %arg2[%c0_1, %c0_2] : memref<512x512xbf16, #tpu.memory_space<vmem>>, vector<512x512xbf16>
    %cst = arith.constant dense<0.000000e+00> : vector<16x512xf32>
    %3 = tpu.matmul %1, %2, %cst {dimension_numbers = #tpu.dot_dimension_numbers<[1], [0], [0], [1], [0, 0, 1, 1], [], []>} : vector<16x512xbf16>, vector<512x512xbf16>, vector<16x512xf32> -> vector<16x512xf32>
    %c0_3 = arith.constant 0 : index
    %c0_4 = arith.constant 0 : index
    %4 = vector.load %arg3[%c0_3, %c0_4] : memref<1x512xf32, #tpu.memory_space<vmem>>, vector<1x512xf32>
    %5 = vector.broadcast %4 : vector<1x512xf32> to vector<16x512xf32>
    %6 = arith.addf %3, %5 : vector<16x512xf32>
    %7 = math.tanh %6 : vector<16x512xf32>
    %8 = arith.truncf %7 : vector<16x512xf32> to vector<16x512xbf16>
    %c0_5 = arith.constant 0 : index
    %c0_6 = arith.constant 0 : index
    %9 = vector.load %arg4[%c0_5, %c0_6] : memref<512x16xbf16, #tpu.memory_space<vmem>>, vector<512x16xbf16>
    %cst_7 = arith.constant dense<0.000000e+00> : vector<16x16xf32>
    %10 = tpu.matmul %8, %9, %cst_7 {dimension_numbers = #tpu.dot_dimension_numbers<[1], [0], [0], [1], [0, 0, 1, 1], [], []>} : vector<16x512xbf16>, vector<512x16xbf16>, vector<16x16xf32> -> vector<16x16xf32>
    %c0_8 = arith.constant 0 : index
    %c0_9 = arith.constant 0 : index
    %11 = vector.load %arg5[%c0_8, %c0_9] : memref<1x1xf32, #tpu.memory_space<vmem>>, vector<1x1xf32>
    %12 = vector.extract %11[0, 0] : f32 from vector<1x1xf32>
    %13 = vector.broadcast %12 : f32 to vector<16x16xf32>
    %14 = arith.addf %10, %13 : vector<16x16xf32>
    %cst_10 = arith.constant dense<0xFF800000> : vector<16xf32>
    %15 = vector.multi_reduction <maximumf>, %14, %cst_10 [1] : vector<16x16xf32> to vector<16xf32>
    %16 = vector.shape_cast %15 : vector<16xf32> to vector<16x1xf32>
    %17 = vector.broadcast %16 : vector<16x1xf32> to vector<16x16xf32>
    %18 = arith.subf %14, %17 : vector<16x16xf32>
    %19 = math.exp %18 : vector<16x16xf32>
    %cst_11 = arith.constant dense<0.000000e+00> : vector<16xf32>
    %20 = vector.multi_reduction <add>, %19, %cst_11 [1] : vector<16x16xf32> to vector<16xf32>
    %21 = vector.shape_cast %20 : vector<16xf32> to vector<16x1xf32>
    %22 = vector.broadcast %21 : vector<16x1xf32> to vector<16x16xf32>
    %23 = arith.divf %19, %22 : vector<16x16xf32>
    %c0_12 = arith.constant 0 : index
    %c0_13 = arith.constant 0 : index
    %24 = vector.load %arg8[%c0_12, %c0_13] : memref<16x16xf32, #tpu.memory_space<vmem>>, vector<16x16xf32>
    tpu.vector_store %arg8[%c0_12, %c0_13], %23 {strides = array<i32>} : memref<16x16xf32, #tpu.memory_space<vmem>>, vector<16x16xf32>,
    %25 = arith.truncf %23 : vector<16x16xf32> to vector<16x16xbf16>
    %c0_14 = arith.constant 0 : index
    %c0_15 = arith.constant 0 : index
    %26 = vector.load %arg6[%c0_14, %c0_15] : memref<16x512xbf16, #tpu.memory_space<vmem>>, vector<16x512xbf16>
    %cst_16 = arith.constant dense<0.000000e+00> : vector<16x512xf32>
    %27 = tpu.matmul %25, %26, %cst_16 {dimension_numbers = #tpu.dot_dimension_numbers<[1], [0], [0], [1], [0, 0, 1, 1], [], []>} : vector<16x16xbf16>, vector<16x512xbf16>, vector<16x512xf32> -> vector<16x512xf32>
    %28 = arith.mulf %27, %0 : vector<16x512xf32>
    %29 = vector.extract_strided_slice %28 {offsets = [0, 0], sizes = [16, 128], strides = [1, 1]} : vector<16x512xf32> to vector<16x128xf32>
    %30 = vector.extract_strided_slice %28 {offsets = [0, 128], sizes = [16, 128], strides = [1, 1]} : vector<16x512xf32> to vector<16x128xf32>
    %31 = arith.addf %29, %30 : vector<16x128xf32>
    %32 = vector.extract_strided_slice %28 {offsets = [0, 256], sizes = [16, 128], strides = [1, 1]} : vector<16x512xf32> to vector<16x128xf32>
    %33 = arith.addf %31, %32 : vector<16x128xf32>
    %34 = vector.extract_strided_slice %28 {offsets = [0, 384], sizes = [16, 128], strides = [1, 1]} : vector<16x512xf32> to vector<16x128xf32>
    %35 = arith.addf %33, %34 : vector<16x128xf32>
    %c32_i32 = arith.constant 32 : i32
    %36 = tpu.dynamic_rotate %35 by %c32_i32 dim 1 : vector<16x128xf32>, i32 -> vector<16x128xf32>
    %37 = arith.addf %35, %36 : vector<16x128xf32>
    %c64_i32 = arith.constant 64 : i32
    %38 = tpu.dynamic_rotate %35 by %c64_i32 dim 1 : vector<16x128xf32>, i32 -> vector<16x128xf32>
    %39 = arith.addf %37, %38 : vector<16x128xf32>
    %c96_i32 = arith.constant 96 : i32
    %40 = tpu.dynamic_rotate %35 by %c96_i32 dim 1 : vector<16x128xf32>, i32 -> vector<16x128xf32>
    %41 = arith.addf %39, %40 : vector<16x128xf32>
    %42 = vector.extract_strided_slice %41 {offsets = [0, 0], sizes = [16, 32], strides = [1, 1]} : vector<16x128xf32> to vector<16x32xf32>
    %c0_17 = arith.constant 0 : index
    %c0_18 = arith.constant 0 : index
    %43 = vector.load %arg7[%c0_17, %c0_18] : memref<16x32xf32, #tpu.memory_space<vmem>>, vector<16x32xf32>
    tpu.vector_store %arg7[%c0_17, %c0_18], %42 {strides = array<i32>} : memref<16x32xf32, #tpu.memory_space<vmem>>, vector<16x32xf32>,
    return
  }
  func.func @transform_0(%arg0: i32) -> (i32, i32) {
    %c0_i32 = arith.constant 0 : i32
    %c0_i32_0 = arith.constant 0 : i32
    return %arg0, %c0_i32 : i32, i32
  }
  func.func @transform_1(%arg0: i32) -> (i32, i32) {
    %c0_i32 = arith.constant 0 : i32
    %c0_i32_0 = arith.constant 0 : i32
    %c0_i32_1 = arith.constant 0 : i32
    return %c0_i32, %c0_i32_0 : i32, i32
  }
  func.func @transform_2(%arg0: i32) -> (i32, i32) {
    %c0_i32 = arith.constant 0 : i32
    %c0_i32_0 = arith.constant 0 : i32
    %c0_i32_1 = arith.constant 0 : i32
    return %c0_i32, %c0_i32_0 : i32, i32
  }
  func.func @transform_3(%arg0: i32) -> (i32, i32) {
    %c0_i32 = arith.constant 0 : i32
    %c0_i32_0 = arith.constant 0 : i32
    %c0_i32_1 = arith.constant 0 : i32
    return %c0_i32, %c0_i32_0 : i32, i32
  }
  func.func @transform_4(%arg0: i32) -> (i32, i32) {
    %c0_i32 = arith.constant 0 : i32
    %c0_i32_0 = arith.constant 0 : i32
    %c0_i32_1 = arith.constant 0 : i32
    return %c0_i32, %c0_i32_0 : i32, i32
  }
  func.func @transform_5(%arg0: i32) -> (i32, i32) {
    %c0_i32 = arith.constant 0 : i32
    %c0_i32_0 = arith.constant 0 : i32
    %c0_i32_1 = arith.constant 0 : i32
    return %c0_i32, %c0_i32_0 : i32, i32
  }
  func.func @transform_6(%arg0: i32) -> (i32, i32) {
    %c0_i32 = arith.constant 0 : i32
    %c0_i32_0 = arith.constant 0 : i32
    return %arg0, %c0_i32 : i32, i32
  }
  func.func @transform_7(%arg0: i32) -> (i32, i32) {
    %c0_i32 = arith.constant 0 : i32
    %c0_i32_0 = arith.constant 0 : i32
    return %arg0, %c0_i32 : i32, i32
  }
}

</mosaic_0001>

<bundles_post_ra>
// kernel: tile.9
= control target key start
LH: loop header
LB: loop body
LE: loop exit
PB: predicated region body
PF: predicated region fallthrough
CT: control target
= control target key end

     0   :  { %s62_s8 = smov 96   ;;  %vm3_vm0 = vcmask 261120   ;;  %s64_s15 = smov 64   ;;  %vm9_vm1 = vcmask 1048320   ;;  %vm15_vm2 = vcmask 785920   ;;  %vm21_vm3 = vcmask 523520   ;;  %s99_s0 = inlined_call_operand.vmem [shape: f32[16,32], index: 0, kind: input, shape index: {}]   ;;  %s100_s1 = inlined_call_operand.vmem [shape: f32[1,512], index: 1, kind: output, shape index: {}]  }
   0x1   :  { %v53_v0 = vld [vmem:[%s99_s0 + $0x3] ss:$4 sm:$0xf]   ;;  %v54_v1 = vld [vmem:[%s99_s0 + $0x2] ss:$4 sm:$0xf]  }
   0x2   :  { %7 = vrot.lane.b32.xlu0 %v53_v0, %s62_s8  ;;  %v55_v2 = vld [vmem:[%s99_s0 + $0x1] ss:$4 sm:$0xf]   ;;  %v2_v3 = vld [vmem:[%s99_s0] ss:$4 sm:$0xf]  }
   0x3   :  { %s63_s0 = smov 32   ;;  %4 = vst.msk [vmem:[#allocation0] ss:$8 sm:$0xf] %vm3_vm0, %v2_v3  }
   0x4   :  { %19 = vrot.lane.b32.xlu1 %v55_v2, %s63_s0 }
   0x6   :  { %13 = vrot.lane.b32.xlu0 %v54_v1, %s64_s15 }
  0x74   :  { %v8_v4 = vpop.permute.xlu0 %7  }
  0x75   :  { %10 = vst.msk [vmem:[#allocation0] ss:$8 sm:$0xf] %vm9_vm1, %v8_v4  }
  0x76   :  { %v20_v5 = vpop.permute.xlu1 %19  }
  0x78   :  { %v14_v6 = vpop.permute.xlu0 %13  }
  0x79   :  { %16 = vst.msk [vmem:[#allocation0] ss:$8 sm:$0xf] %vm15_vm2, %v14_v6  }
  0x7a   :  { %22 = vst.msk [vmem:[#allocation0] ss:$8 sm:$0xf] %vm21_vm3, %v20_v5  }
  0x81   :  { %v27_v7 = vld [vmem:[#allocation0] sm:$0x1]  ;;  %v32_v8 = vld [vmem:[#allocation0 + $0x8] sm:$0x1]  ;;  %v38_v9 = vld [vmem:[#allocation0 + $0x10] sm:$0x1] }
  0x82   :  { %30 = vst [vmem:[%s100_s1] sm:$0x1] %v27_v7  ;;  %56 = vst [vmem:[%s100_s1 + $0x1] sm:$0x1] %v32_v8  ;;  %v45_v10 = vld [vmem:[#allocation0 + $0x18] sm:$0x1] }
  0x83   :  { %57 = vst [vmem:[%s100_s1 + $0x2] sm:$0x1] %v38_v9  ;;  %58 = vst [vmem:[%s100_s1 + $0x3] sm:$0x1] %v45_v10 }

// kernel: spatial_attention.1
= control target key start
LH: loop header
LB: loop body
LE: loop exit
PB: predicated region body
PF: predicated region fallthrough
CT: control target
= control target key end

     0   :  { %s2711_s0 = inlined_call_operand.vmem [shape: f32[16,512], index: 0, kind: input, shape index: {}]   ;;  %s2712_s1 = inlined_call_operand.vmem [shape: bf16[512,512], index: 1, kind: input, shape index: {}]   ;;  %s2713_s2 = inlined_call_operand.vmem [shape: f32[1,512], index: 2, kind: input, shape index: {}]   ;;  %s2714_s3 = inlined_call_operand.vmem [shape: bf16[512,16], index: 3, kind: input, shape index: {}]   ;;  %s2715_s4 = inlined_call_operand.<no memory space> [shape: f32[1,1], index: 4, kind: input, shape index: {}]   ;;  %s2716_s5 = inlined_call_operand.vmem [shape: bf16[16,512], index: 5, kind: input, shape index: {}]   ;;  %s2717_s6 = inlined_call_operand.hbm [shape: f32[16,32], index: 6, kind: output, shape index: {0}]   ;;  %s2718_s7 = inlined_call_operand.hbm [shape: f32[16,16], index: 7, kind: output, shape index: {1}]  }
   0x1   :  { %v13_v0 = vstv %s2715_s4 }
   0x2   :  { %14 = vst [vmem:[#allocation2] sm:$0x1] %v13_v0 }
   0x3   :  { %15 = vsyncpa [#allocation4], 0  ;;  %v1783_v1 = vld [vmem:[%s2712_s1 + $0xe4] ss:$16 sps:$4 sm:$0xff]   ;;  %v1787_v3 = vld [vmem:[%s2712_s1 + $0xe0] ss:$16 sps:$4 sm:$0xff]  }
   0x4   :  { %v1785_v2 = vld [vmem:[%s2712_s1 + $0x2e4] ss:$16 sps:$4 sm:$0xff]   ;;  %832 = vmatprep.subr.bf16.mxu0 %v1783_v1  ;;  %v1788_v4 = vld [vmem:[%s2712_s1 + $0x2e0] ss:$16 sps:$4 sm:$0xff]   ;;  %v31_v47 = vld [vmem:[%s2711_s0 + $0x8] sm:$0xff] }
   0x5   :  { %875 = vmatprep.subr.bf16.mxu1 %v1785_v2  ;;  %v1789_v5 = vld [vmem:[%s2712_s1 + $0xc4] ss:$16 sps:$4 sm:$0xff]   ;;  %833 = vmatpush1.bf16.msra.mxu0 %v1787_v3  ;;  %v1793_v7 = vld [vmem:[%s2712_s1 + $0xc0] ss:$16 sps:$4 sm:$0xff]   ;;  %v35_v48 = vld [vmem:[%s2711_s0 + $0x28] sm:$0xff] }
   0x6   :  { %876 = vmatpush1.bf16.msra.mxu1 %v1788_v4  ;;  %v1791_v6 = vld [vmem:[%s2712_s1 + $0x2c4] ss:$16 sps:$4 sm:$0xff]   ;;  %834 = vmatprep.subr.bf16.mxu0 %v1789_v5  ;;  %v1794_v8 = vld [vmem:[%s2712_s1 + $0x2c0] ss:$16 sps:$4 sm:$0xff]   ;;  %v33_v49 = vld [vmem:[%s2711_s0 + $0x18] sm:$0xff]  ;;  %v39_v54 = vpack.c.bf16 %v35_v48, %v31_v47 }
   0x7   :  { %877 = vmatprep.subr.bf16.mxu1 %v1791_v6  ;;  %v1795_v9 = vld [vmem:[%s2712_s1 + $0xa4] ss:$16 sps:$4 sm:$0xff]   ;;  %v1799_v11 = vld [vmem:[%s2712_s1 + $0xa0] ss:$16 sps:$4 sm:$0xff]   ;;  %v37_v50 = vld [vmem:[%s2711_s0 + $0x38] sm:$0xff] }
   0x8   :  { %v1797_v10 = vld [vmem:[%s2712_s1 + $0x2a4] ss:$16 sps:$4 sm:$0xff]   ;;  %v1800_v12 = vld [vmem:[%s2712_s1 + $0x2a0] ss:$16 sps:$4 sm:$0xff]   ;;  %v41_v55 = vpack.c.bf16 %v37_v50, %v33_v49  ;;  %864 = vmatprep.mubr.bf16.mxu0 %v39_v54  ;;  %v1927_v47 = vld [vmem:[%s2712_s1 + $0x1e8] ss:$16 sps:$4 sm:$0xff]  }
   0x9   :  { %835 = vmatpush1.bf16.msra.mxu0 %v1793_v7  ;;  %v1801_v13 = vld [vmem:[%s2712_s1 + $0x84] ss:$16 sps:$4 sm:$0xff]   ;;  %v1805_v15 = vld [vmem:[%s2712_s1 + $0x80] ss:$16 sps:$4 sm:$0xff]   ;;  %v1930_v48 = vld [vmem:[%s2712_s1 + $0x3e8] ss:$16 sps:$4 sm:$0xff]  }
   0xa   :  { %878 = vmatpush1.bf16.msra.mxu1 %v1794_v8  ;;  %836 = vmatprep.subr.bf16.mxu0 %v1795_v9  ;;  %v1803_v14 = vld [vmem:[%s2712_s1 + $0x284] ss:$16 sps:$4 sm:$0xff]   ;;  %v1806_v16 = vld [vmem:[%s2712_s1 + $0x280] ss:$16 sps:$4 sm:$0xff]   ;;  %v1935_v49 = vld [vmem:[%s2712_s1 + $0x1cc] ss:$16 sps:$4 sm:$0xff]  }
   0xb   :  { %879 = vmatprep.subr.bf16.mxu1 %v1797_v10  ;;  %v1807_v17 = vld [vmem:[%s2712_s1 + $0x64] ss:$16 sps:$4 sm:$0xff]   ;;  %v1811_v19 = vld [vmem:[%s2712_s1 + $0x60] ss:$16 sps:$4 sm:$0xff]   ;;  %907 = vmatprep.mubr.bf16.mxu1 %v41_v55  ;;  %v1938_v50 = vld [vmem:[%s2712_s1 + $0x3cc] ss:$16 sps:$4 sm:$0xff]  }
   0xc   :  { %v1809_v18 = vld [vmem:[%s2712_s1 + $0x264] ss:$16 sps:$4 sm:$0xff]   ;;  %v1812_v20 = vld [vmem:[%s2712_s1 + $0x260] ss:$16 sps:$4 sm:$0xff]  }
   0xd   :  { %837 = vmatpush1.bf16.msra.mxu0 %v1799_v11  ;;  %v1813_v21 = vld [vmem:[%s2712_s1 + $0x44] ss:$16 sps:$4 sm:$0xff]   ;;  %v1817_v23 = vld [vmem:[%s2712_s1 + $0x40] ss:$16 sps:$4 sm:$0xff]   ;;  %v1881_v11 = vld [vmem:[%s2712_s1 + $0xec] ss:$16 sps:$4 sm:$0xff]  }
   0xe   :  { %880 = vmatpush1.bf16.msra.mxu1 %v1800_v12  ;;  %838 = vmatprep.subr.bf16.mxu0 %v1801_v13  ;;  %v1815_v22 = vld [vmem:[%s2712_s1 + $0x244] ss:$16 sps:$4 sm:$0xff]   ;;  %v1818_v24 = vld [vmem:[%s2712_s1 + $0x240] ss:$16 sps:$4 sm:$0xff]   ;;  %v1884_v12 = vld [vmem:[%s2712_s1 + $0x2ec] ss:$16 sps:$4 sm:$0xff]  }
   0xf   :  { %881 = vmatprep.subr.bf16.mxu1 %v1803_v14  ;;  %v1819_v25 = vld [vmem:[%s2712_s1 + $0x24] ss:$16 sps:$4 sm:$0xff]   ;;  %v1823_v27 = vld [vmem:[%s2712_s1 + $0x20] ss:$16 sps:$4 sm:$0xff]  }
  0x10   :  { %v1821_v26 = vld [vmem:[%s2712_s1 + $0x224] ss:$16 sps:$4 sm:$0xff]   ;;  %v1824_v28 = vld [vmem:[%s2712_s1 + $0x220] ss:$16 sps:$4 sm:$0xff]  }
  0x11   :  { %839 = vmatpush1.bf16.msra.mxu0 %v1805_v15  ;;  %v1825_v29 = vld [vmem:[%s2712_s1 + $0x4] ss:$16 sps:$4 sm:$0xff]   ;;  %v1829_v31 = vld [vmem:[%s2712_s1] ss:$16 sps:$4 sm:$0xff]   ;;  %v1879_v15 = vld [vmem:[%s2712_s1 + $0xe8] ss:$16 sps:$4 sm:$0xff]  }
  0x12   :  { %882 = vmatpush1.bf16.msra.mxu1 %v1806_v16  ;;  %840 = vmatprep.subr.bf16.mxu0 %v1807_v17  ;;  %v1827_v30 = vld [vmem:[%s2712_s1 + $0x204] ss:$16 sps:$4 sm:$0xff]   ;;  %v1830_v32 = vld [vmem:[%s2712_s1 + $0x200] ss:$16 sps:$4 sm:$0xff]   ;;  %v1882_v16 = vld [vmem:[%s2712_s1 + $0x2e8] ss:$16 sps:$4 sm:$0xff]  }
  0x13   :  { %883 = vmatprep.subr.bf16.mxu1 %v1809_v18  ;;  %v1831_v33 = vld [vmem:[%s2712_s1 + $0x1e4] ss:$16 sps:$4 sm:$0xff]   ;;  %v1835_v35 = vld [vmem:[%s2712_s1 + $0x1e0] ss:$16 sps:$4 sm:$0xff]   ;;  %v1887_v17 = vld [vmem:[%s2712_s1 + $0xcc] ss:$16 sps:$4 sm:$0xff]  }
  0x14   :  { %v1833_v34 = vld [vmem:[%s2712_s1 + $0x3e4] ss:$16 sps:$4 sm:$0xff]   ;;  %v1836_v36 = vld [vmem:[%s2712_s1 + $0x3e0] ss:$16 sps:$4 sm:$0xff]   ;;  %v1890_v18 = vld [vmem:[%s2712_s1 + $0x2cc] ss:$16 sps:$4 sm:$0xff]  }
  0x15   :  { %841 = vmatpush1.bf16.msra.mxu0 %v1811_v19  ;;  %v1837_v37 = vld [vmem:[%s2712_s1 + $0x1c4] ss:$16 sps:$4 sm:$0xff]   ;;  %v1841_v39 = vld [vmem:[%s2712_s1 + $0x1c0] ss:$16 sps:$4 sm:$0xff]   ;;  %v1885_v19 = vld [vmem:[%s2712_s1 + $0xc8] ss:$16 sps:$4 sm:$0xff]  }
  0x16   :  { %884 = vmatpush1.bf16.msra.mxu1 %v1812_v20  ;;  %842 = vmatprep.subr.bf16.mxu0 %v1813_v21  ;;  %v1839_v38 = vld [vmem:[%s2712_s1 + $0x3c4] ss:$16 sps:$4 sm:$0xff]   ;;  %v1842_v40 = vld [vmem:[%s2712_s1 + $0x3c0] ss:$16 sps:$4 sm:$0xff]   ;;  %v1888_v20 = vld [vmem:[%s2712_s1 + $0x2c8] ss:$16 sps:$4 sm:$0xff]  }
  0x17   :  { %885 = vmatprep.subr.bf16.mxu1 %v1815_v22  ;;  %v1843_v41 = vld [vmem:[%s2712_s1 + $0x1a4] ss:$16 sps:$4 sm:$0xff]   ;;  %v1847_v43 = vld [vmem:[%s2712_s1 + $0x1a0] ss:$16 sps:$4 sm:$0xff]   ;;  %v1893_v21 = vld [vmem:[%s2712_s1 + $0xac] ss:$16 sps:$4 sm:$0xff]  }
  0x18   :  { %v1845_v42 = vld [vmem:[%s2712_s1 + $0x3a4] ss:$16 sps:$4 sm:$0xff]   ;;  %v1848_v44 = vld [vmem:[%s2712_s1 + $0x3a0] ss:$16 sps:$4 sm:$0xff]   ;;  %v1896_v22 = vld [vmem:[%s2712_s1 + $0x2ac] ss:$16 sps:$4 sm:$0xff]  }
  0x19   :  { %843 = vmatpush1.bf16.msra.mxu0 %v1817_v23  ;;  %v1849_v45 = vld [vmem:[%s2712_s1 + $0x184] ss:$16 sps:$4 sm:$0xff]   ;;  %v1853_v51 = vld [vmem:[%s2712_s1 + $0x180] ss:$16 sps:$4 sm:$0xff]   ;;  %v1891_v23 = vld [vmem:[%s2712_s1 + $0xa8] ss:$16 sps:$4 sm:$0xff]  }
  0x1a   :  { %886 = vmatpush1.bf16.msra.mxu1 %v1818_v24  ;;  %844 = vmatprep.subr.bf16.mxu0 %v1819_v25  ;;  %v1851_v46 = vld [vmem:[%s2712_s1 + $0x384] ss:$16 sps:$4 sm:$0xff]   ;;  %v1854_v52 = vld [vmem:[%s2712_s1 + $0x380] ss:$16 sps:$4 sm:$0xff]   ;;  %v1894_v24 = vld [vmem:[%s2712_s1 + $0x2a8] ss:$16 sps:$4 sm:$0xff]  }
  0x1b   :  { %887 = vmatprep.subr.bf16.mxu1 %v1821_v26  ;;  %v1855_v53 = vld [vmem:[%s2712_s1 + $0x164] ss:$16 sps:$4 sm:$0xff]   ;;  %v1859_v57 = vld [vmem:[%s2712_s1 + $0x160] ss:$16 sps:$4 sm:$0xff]   ;;  %v1899_v25 = vld [vmem:[%s2712_s1 + $0x8c] ss:$16 sps:$4 sm:$0xff]  }
  0x1c   :  { %v1857_v56 = vld [vmem:[%s2712_s1 + $0x364] ss:$16 sps:$4 sm:$0xff]   ;;  %v1860_v58 = vld [vmem:[%s2712_s1 + $0x360] ss:$16 sps:$4 sm:$0xff]   ;;  %v1902_v26 = vld [vmem:[%s2712_s1 + $0x28c] ss:$16 sps:$4 sm:$0xff]  }
  0x1d   :  { %845 = vmatpush1.bf16.msra.mxu0 %v1823_v27  ;;  %v1861_v59 = vld [vmem:[%s2712_s1 + $0x144] ss:$16 sps:$4 sm:$0xff]   ;;  %v1865_v61 = vld [vmem:[%s2712_s1 + $0x140] ss:$16 sps:$4 sm:$0xff]   ;;  %v1897_v27 = vld [vmem:[%s2712_s1 + $0x88] ss:$16 sps:$4 sm:$0xff]  }
  0x1e   :  { %888 = vmatpush1.bf16.msra.mxu1 %v1824_v28  ;;  %846 = vmatprep.subr.bf16.mxu0 %v1825_v29  ;;  %v1863_v60 = vld [vmem:[%s2712_s1 + $0x344] ss:$16 sps:$4 sm:$0xff]   ;;  %v1866_v62 = vld [vmem:[%s2712_s1 + $0x340] ss:$16 sps:$4 sm:$0xff]   ;;  %v1900_v28 = vld [vmem:[%s2712_s1 + $0x288] ss:$16 sps:$4 sm:$0xff]  }
  0x1f   :  { %889 = vmatprep.subr.bf16.mxu1 %v1827_v30  ;;  %v1867_v63 = vld [vmem:[%s2712_s1 + $0x124] ss:$16 sps:$4 sm:$0xff]   ;;  %v1871_v1 = vld [vmem:[%s2712_s1 + $0x120] ss:$16 sps:$4 sm:$0xff]   ;;  %v1905_v29 = vld [vmem:[%s2712_s1 + $0x6c] ss:$16 sps:$4 sm:$0xff]  }
  0x20   :  { %v1869_v0 = vld [vmem:[%s2712_s1 + $0x324] ss:$16 sps:$4 sm:$0xff]   ;;  %v1872_v2 = vld [vmem:[%s2712_s1 + $0x320] ss:$16 sps:$4 sm:$0xff]   ;;  %v1908_v30 = vld [vmem:[%s2712_s1 + $0x26c] ss:$16 sps:$4 sm:$0xff]  }
  0x21   :  { %847 = vmatpush1.bf16.msra.mxu0 %v1829_v31  ;;  %v1873_v3 = vld [vmem:[%s2712_s1 + $0x104] ss:$16 sps:$4 sm:$0xff]   ;;  %v1877_v5 = vld [vmem:[%s2712_s1 + $0x100] ss:$16 sps:$4 sm:$0xff]   ;;  %v1903_v31 = vld [vmem:[%s2712_s1 + $0x68] ss:$16 sps:$4 sm:$0xff]  }
  0x22   :  { %890 = vmatpush1.bf16.msra.mxu1 %v1830_v32  ;;  %848 = vmatprep.subr.bf16.mxu0 %v1831_v33  ;;  %v1875_v4 = vld [vmem:[%s2712_s1 + $0x304] ss:$16 sps:$4 sm:$0xff]   ;;  %v1878_v6 = vld [vmem:[%s2712_s1 + $0x300] ss:$16 sps:$4 sm:$0xff]   ;;  %v1906_v32 = vld [vmem:[%s2712_s1 + $0x268] ss:$16 sps:$4 sm:$0xff]  }
  0x23   :  { %891 = vmatprep.subr.bf16.mxu1 %v1833_v34  ;;  %v2343_v7 = vld [vmem:[%s2711_s0] sm:$0xff]  ;;  %v2353_v9 = vld [vmem:[%s2711_s0 + $0x10] sm:$0xff]  ;;  %v1911_v33 = vld [vmem:[%s2712_s1 + $0x4c] ss:$16 sps:$4 sm:$0xff]  }
  0x24   :  { %v2348_v8 = vld [vmem:[%s2711_s0 + $0x20] sm:$0xff]  ;;  %v2358_v10 = vld [vmem:[%s2711_s0 + $0x30] sm:$0xff]  ;;  %v1914_v34 = vld [vmem:[%s2712_s1 + $0x24c] ss:$16 sps:$4 sm:$0xff]  }
  0x25   :  { %849 = vmatpush2.bf16.msra.mxu0 %v1835_v35  ;;  %v2368_v13 = vpack.c.bf16 %v2348_v8, %v2343_v7  ;;  %v2372_v14 = vpack.c.bf16 %v2358_v10, %v2353_v9  ;;  %v1909_v35 = vld [vmem:[%s2712_s1 + $0x48] ss:$16 sps:$4 sm:$0xff]  }
  0x26   :  { %892 = vmatpush2.bf16.msra.mxu1 %v1836_v36  ;;  %850 = vmatprep.subr.bf16.mxu0 %v1837_v37  ;;  %v1912_v36 = vld [vmem:[%s2712_s1 + $0x248] ss:$16 sps:$4 sm:$0xff]   ;;  %v1917_v37 = vld [vmem:[%s2712_s1 + $0x2c] ss:$16 sps:$4 sm:$0xff]  }
  0x27   :  { %893 = vmatprep.subr.bf16.mxu1 %v1839_v38  ;;  %v1920_v38 = vld [vmem:[%s2712_s1 + $0x22c] ss:$16 sps:$4 sm:$0xff]  }
  0x29   :  { %851 = vmatpush2.bf16.msra.mxu0 %v1841_v39  ;;  %v1915_v39 = vld [vmem:[%s2712_s1 + $0x28] ss:$16 sps:$4 sm:$0xff]  }
  0x2a   :  { %894 = vmatpush2.bf16.msra.mxu1 %v1842_v40  ;;  %852 = vmatprep.subr.bf16.mxu0 %v1843_v41  ;;  %v1918_v40 = vld [vmem:[%s2712_s1 + $0x228] ss:$16 sps:$4 sm:$0xff]   ;;  %v1923_v41 = vld [vmem:[%s2712_s1 + $0xc] ss:$16 sps:$4 sm:$0xff]  }
  0x2b   :  { %895 = vmatprep.subr.bf16.mxu1 %v1845_v42  ;;  %v1926_v42 = vld [vmem:[%s2712_s1 + $0x20c] ss:$16 sps:$4 sm:$0xff]  }
  0x2d   :  { %853 = vmatpush2.bf16.msra.mxu0 %v1847_v43  ;;  %v1921_v43 = vld [vmem:[%s2712_s1 + $0x8] ss:$16 sps:$4 sm:$0xff]  }
  0x2e   :  { %896 = vmatpush2.bf16.msra.mxu1 %v1848_v44  ;;  %854 = vmatprep.subr.bf16.mxu0 %v1849_v45  ;;  %v1924_v44 = vld [vmem:[%s2712_s1 + $0x208] ss:$16 sps:$4 sm:$0xff]   ;;  %v1929_v45 = vld [vmem:[%s2712_s1 + $0x1ec] ss:$16 sps:$4 sm:$0xff]  }
  0x2f   :  { %897 = vmatprep.subr.bf16.mxu1 %v1851_v46  ;;  %v1932_v46 = vld [vmem:[%s2712_s1 + $0x3ec] ss:$16 sps:$4 sm:$0xff]  }
  0x31   :  { %855 = vmatpush2.bf16.msra.mxu0 %v1853_v51  ;;  %v1933_v51 = vld [vmem:[%s2712_s1 + $0x1c8] ss:$16 sps:$4 sm:$0xff]  }
  0x32   :  { %898 = vmatpush2.bf16.msra.mxu1 %v1854_v52  ;;  %856 = vmatprep.subr.bf16.mxu0 %v1855_v53  ;;  %v1936_v52 = vld [vmem:[%s2712_s1 + $0x3c8] ss:$16 sps:$4 sm:$0xff]   ;;  %v1941_v53 = vld [vmem:[%s2712_s1 + $0x1ac] ss:$16 sps:$4 sm:$0xff]  }
  0x33   :  { %899 = vmatprep.subr.bf16.mxu1 %v1857_v56  ;;  %v1942_v56 = vld [vmem:[%s2712_s1 + $0x3a8] ss:$16 sps:$4 sm:$0xff]  }
  0x35   :  { %857 = vmatpush2.bf16.msra.mxu0 %v1859_v57  ;;  %v1947_v57 = vld [vmem:[%s2712_s1 + $0x18c] ss:$16 sps:$4 sm:$0xff]  }
  0x36   :  { %900 = vmatpush2.bf16.msra.mxu1 %v1860_v58  ;;  %858 = vmatprep.subr.bf16.mxu0 %v1861_v59  ;;  %v1950_v58 = vld [vmem:[%s2712_s1 + $0x38c] ss:$16 sps:$4 sm:$0xff]   ;;  %v1945_v59 = vld [vmem:[%s2712_s1 + $0x188] ss:$16 sps:$4 sm:$0xff]  }
  0x37   :  { %901 = vmatprep.subr.bf16.mxu1 %v1863_v60  ;;  %v1948_v60 = vld [vmem:[%s2712_s1 + $0x388] ss:$16 sps:$4 sm:$0xff]  }
  0x39   :  { %859 = vmatpush2.bf16.msra.mxu0 %v1865_v61  ;;  %v1953_v61 = vld [vmem:[%s2712_s1 + $0x16c] ss:$16 sps:$4 sm:$0xff]  }
  0x3a   :  { %902 = vmatpush2.bf16.msra.mxu1 %v1866_v62  ;;  %860 = vmatprep.subr.bf16.mxu0 %v1867_v63  ;;  %v1956_v62 = vld [vmem:[%s2712_s1 + $0x36c] ss:$16 sps:$4 sm:$0xff]  }
  0x3b   :  { %903 = vmatprep.subr.bf16.mxu1 %v1869_v0 }
  0x3d   :  { %861 = vmatpush2.bf16.msra.mxu0 %v1871_v1 }
  0x3e   :  { %904 = vmatpush2.bf16.msra.mxu1 %v1872_v2  ;;  %862 = vmatprep.subr.bf16.mxu0 %v1873_v3 }
  0x3f   :  { %905 = vmatprep.subr.bf16.mxu1 %v1875_v4 }
  0x41   :  { %863 = vmatpush2.bf16.msra.mxu0 %v1877_v5 }
  0x42   :  { %906 = vmatpush2.bf16.msra.mxu1 %v1878_v6  ;;  %918 = vmatprep.subr.bf16.mxu0 %v1881_v11 }
  0x43   :  { %961 = vmatprep.subr.bf16.mxu1 %v1884_v12 }
  0x44   :  { %865 = vmatmul.mubr.bf16.vlgmr.msra.gmra.mxu0 %v2368_v13 }
  0x45   :  { %908 = vmatmul.mubr.bf16.vlgmr.msra.gmra.mxu1 %v2372_v14  ;;  %919 = vmatpush1.bf16.msra.mxu0 %v1879_v15 }
  0x46   :  { %962 = vmatpush1.bf16.msra.mxu1 %v1882_v16  ;;  %920 = vmatprep.subr.bf16.mxu0 %v1887_v17 }
  0x47   :  { %963 = vmatprep.subr.bf16.mxu1 %v1890_v18  ;;  %950 = vmatprep.mubr.bf16.mxu0 %v39_v54  ;;  %v1944_v54 = vld [vmem:[%s2712_s1 + $0x3ac] ss:$16 sps:$4 sm:$0xff]  }
  0x48   :  { %993 = vmatprep.mubr.bf16.mxu1 %v41_v55  ;;  %v1939_v55 = vld [vmem:[%s2712_s1 + $0x1a8] ss:$16 sps:$4 sm:$0xff]  }
  0x49   :  { %921 = vmatpush1.bf16.msra.mxu0 %v1885_v19 }
  0x4a   :  { %964 = vmatpush1.bf16.msra.mxu1 %v1888_v20  ;;  %922 = vmatprep.subr.bf16.mxu0 %v1893_v21 }
  0x4b   :  { %965 = vmatprep.subr.bf16.mxu1 %v1896_v22 }
  0x4d   :  { %923 = vmatpush1.bf16.msra.mxu0 %v1891_v23 }
  0x4e   :  { %966 = vmatpush1.bf16.msra.mxu1 %v1894_v24  ;;  %924 = vmatprep.subr.bf16.mxu0 %v1899_v25 }
  0x4f   :  { %967 = vmatprep.subr.bf16.mxu1 %v1902_v26 }
  0x51   :  { %925 = vmatpush1.bf16.msra.mxu0 %v1897_v27 }
  0x52   :  { %968 = vmatpush1.bf16.msra.mxu1 %v1900_v28  ;;  %926 = vmatprep.subr.bf16.mxu0 %v1905_v29 }
  0x53   :  { %969 = vmatprep.subr.bf16.mxu1 %v1908_v30 }
  0x55   :  { %927 = vmatpush1.bf16.msra.mxu0 %v1903_v31 }
  0x56   :  { %970 = vmatpush1.bf16.msra.mxu1 %v1906_v32  ;;  %928 = vmatprep.subr.bf16.mxu0 %v1911_v33 }
  0x57   :  { %971 = vmatprep.subr.bf16.mxu1 %v1914_v34 }
  0x59   :  { %929 = vmatpush1.bf16.msra.mxu0 %v1909_v35 }
  0x5a   :  { %972 = vmatpush1.bf16.msra.mxu1 %v1912_v36  ;;  %930 = vmatprep.subr.bf16.mxu0 %v1917_v37 }
  0x5b   :  { %973 = vmatprep.subr.bf16.mxu1 %v1920_v38 }
  0x5d   :  { %931 = vmatpush1.bf16.msra.mxu0 %v1915_v39 }
  0x5e   :  { %974 = vmatpush1.bf16.msra.mxu1 %v1918_v40  ;;  %932 = vmatprep.subr.bf16.mxu0 %v1923_v41 }
  0x5f   :  { %975 = vmatprep.subr.bf16.mxu1 %v1926_v42 }
  0x61   :  { %933 = vmatpush1.bf16.msra.mxu0 %v1921_v43 }
  0x62   :  { %976 = vmatpush1.bf16.msra.mxu1 %v1924_v44  ;;  %934 = vmatprep.subr.bf16.mxu0 %v1929_v45 }
  0x63   :  { %977 = vmatprep.subr.bf16.mxu1 %v1932_v46 }
  0x65   :  { %935 = vmatpush2.bf16.msra.mxu0 %v1927_v47 }
  0x66   :  { %978 = vmatpush2.bf16.msra.mxu1 %v1930_v48  ;;  %936 = vmatprep.subr.bf16.mxu0 %v1935_v49 }
  0x67   :  { %979 = vmatprep.subr.bf16.mxu1 %v1938_v50 }
  0x69   :  { %937 = vmatpush2.bf16.msra.mxu0 %v1933_v51 }
  0x6a   :  { %980 = vmatpush2.bf16.msra.mxu1 %v1936_v52  ;;  %938 = vmatprep.subr.bf16.mxu0 %v1941_v53 }
  0x6b   :  { %981 = vmatprep.subr.bf16.mxu1 %v1944_v54 }
  0x6d   :  { %939 = vmatpush2.bf16.msra.mxu0 %v1939_v55 }
  0x6e   :  { %982 = vmatpush2.bf16.msra.mxu1 %v1942_v56  ;;  %940 = vmatprep.subr.bf16.mxu0 %v1947_v57 }
  0x6f   :  { %983 = vmatprep.subr.bf16.mxu1 %v1950_v58 }
  0x70   :  { %16 = vsyncpa [#allocation6], 0  ;;  %v1951_v63 = vld [vmem:[%s2712_s1 + $0x168] ss:$16 sps:$4 sm:$0xff]   ;;  %v1959_v1 = vld [vmem:[%s2712_s1 + $0x14c] ss:$16 sps:$4 sm:$0xff]   ;;  %v172_v50 = vlaneseq }
  0x71   :  { %941 = vmatpush2.bf16.msra.mxu0 %v1945_v59  ;;  %v1954_v0 = vld [vmem:[%s2712_s1 + $0x368] ss:$16 sps:$4 sm:$0xff]   ;;  %v1962_v2 = vld [vmem:[%s2712_s1 + $0x34c] ss:$16 sps:$4 sm:$0xff]   ;;  %v1977_v21 = vld [vmem:[%s2714_s3 + $0x70] sm:$0xff]   ;;  %vm1357_vm0 = vcmask 130048  }
  0x72   :  { %984 = vmatpush2.bf16.msra.mxu1 %v1948_v60  ;;  %942 = vmatprep.subr.bf16.mxu0 %v1953_v61  ;;  %v1957_v3 = vld [vmem:[%s2712_s1 + $0x148] ss:$16 sps:$4 sm:$0xff]   ;;  %v1965_v5 = vld [vmem:[%s2712_s1 + $0x12c] ss:$16 sps:$4 sm:$0xff]   ;;  %v1978_v22 = vld [vmem:[%s2714_s3 + $0x30] sm:$0xff]   ;;  %v173_v51 = vshrl.u32 %v172_v50, 7 }
  0x73   :  { %985 = vmatprep.subr.bf16.mxu1 %v1956_v62  ;;  %v1960_v4 = vld [vmem:[%s2712_s1 + $0x348] ss:$16 sps:$4 sm:$0xff]   ;;  %v1968_v6 = vld [vmem:[%s2712_s1 + $0x32c] ss:$16 sps:$4 sm:$0xff]   ;;  %v1985_v27 = vld [vmem:[%s2714_s3 + $0x50] sm:$0xff]   ;;  %s2086_s15 = smov 64  }
  0x74   :  { %v1963_v11 = vld [vmem:[%s2712_s1 + $0x128] ss:$16 sps:$4 sm:$0xff]   ;;  %v1971_v15 = vld [vmem:[%s2712_s1 + $0x10c] ss:$16 sps:$4 sm:$0xff]   ;;  %v1986_v28 = vld [vmem:[%s2714_s3 + $0x10] sm:$0xff]   ;;  %v178_v52 = vsub.s32 1, %v173_v51 }
  0x75   :  { %943 = vmatpush2.bf16.msra.mxu0 %v1951_v63  ;;  %v1966_v12 = vld [vmem:[%s2712_s1 + $0x328] ss:$16 sps:$4 sm:$0xff]   ;;  %v1974_v16 = vld [vmem:[%s2712_s1 + $0x30c] ss:$16 sps:$4 sm:$0xff]   ;;  %v1989_v31 = vld [vmem:[%s2714_s3 + $0x40] sm:$0xff]   ;;  %v174_v54 = vsub.s32 0, %v173_v51 }
  0x76   :  { %986 = vmatpush2.bf16.msra.mxu1 %v1954_v0  ;;  %944 = vmatprep.subr.bf16.mxu0 %v1959_v1  ;;  %v1969_v17 = vld [vmem:[%s2712_s1 + $0x108] ss:$16 sps:$4 sm:$0xff]   ;;  %v1990_v32 = vld [vmem:[%s2714_s3] sm:$0xff]   ;;  %v1993_v35 = vld [vmem:[%s2714_s3 + $0xf0] sm:$0xff]   ;;  %s2088_s16 = smov [#allocation5]  }
  0x77   :  { %987 = vmatprep.subr.bf16.mxu1 %v1962_v2  ;;  %v1972_v18 = vld [vmem:[%s2712_s1 + $0x308] ss:$16 sps:$4 sm:$0xff]   ;;  %v1994_v36 = vld [vmem:[%s2714_s3 + $0xb0] sm:$0xff]   ;;  %v1997_v39 = vld [vmem:[%s2714_s3 + $0xe0] sm:$0xff]   ;;  %s2087_s1 = smov 32   ;;  %s1548_s17 = sshll.u32 %s2088_s16, 4  ;;  %s1549_s17 = int_to_ptr.vmem [resolvable:$true] %s1548_s17 }
  0x78   :  { %v1975_v19 = vld [vmem:[%s2714_s3 + $0x78] sm:$0xff]   ;;  %v1979_v23 = vld [vmem:[%s2714_s3 + $0x68] sm:$0xff]   ;;  %v1998_v40 = vld [vmem:[%s2714_s3 + $0xa0] sm:$0xff]   ;;  %s2041_s18 = scalar_lea.vmem %s1549_s17, 256  ;;  %p2046_p1 = scmp.lt.s32.totalorder %s1549_s17, %s1549_s17 }
  0x79   :  { %945 = vmatpush2.bf16.msra.mxu0 %v1957_v3  ;;  %v1976_v20 = vld [vmem:[%s2714_s3 + $0x38] sm:$0xff]   ;;  %v1980_v24 = vld [vmem:[%s2714_s3 + $0x28] sm:$0xff]   ;;  %v2001_v43 = vld [vmem:[%s2714_s3 + $0xd0] sm:$0xff]   ;;  %p2042_p0 = scmp.ne.s32.totalorder %s1549_s17, %s2041_s18  ;;  %p2047_p2 = scmp.lt.s32.totalorder %s2041_s18, %s2041_s18 }
  0x7a   :  { %988 = vmatpush2.bf16.msra.mxu1 %v1960_v4  ;;  %946 = vmatprep.subr.bf16.mxu0 %v1965_v5  ;;  %v1983_v25 = vld [vmem:[%s2714_s3 + $0x58] sm:$0xff]   ;;  %v1987_v29 = vld [vmem:[%s2714_s3 + $0x48] sm:$0xff]   ;;  %v2002_v44 = vld [vmem:[%s2714_s3 + $0x90] sm:$0xff]  }
  0x7b   :  { %989 = vmatprep.subr.bf16.mxu1 %v1968_v6  ;;  %v1984_v26 = vld [vmem:[%s2714_s3 + $0x18] sm:$0xff]   ;;  %v1988_v30 = vld [vmem:[%s2714_s3 + $0x8] sm:$0xff]   ;;  %v2005_v47 = vld [vmem:[%s2714_s3 + $0xc0] sm:$0xff]   ;;  %p2048_p3 = por %p2047_p2, %p2046_p1 }
  0x7c   :  { %v1991_v33 = vld [vmem:[%s2714_s3 + $0xf8] sm:$0xff]   ;;  %v1995_v37 = vld [vmem:[%s2714_s3 + $0xe8] sm:$0xff]   ;;  %v2006_v48 = vld [vmem:[%s2714_s3 + $0x80] sm:$0xff]  }
  0x7d   :  { %947 = vmatpush2.bf16.msra.mxu0 %v1963_v11  ;;  %v1992_v34 = vld [vmem:[%s2714_s3 + $0xb8] sm:$0xff]   ;;  %v1996_v38 = vld [vmem:[%s2714_s3 + $0xa8] sm:$0xff]   ;;  %v1080_v49 = vld [vmem:[#allocation2] sm:$0x1]  ;;  %p2049_p4 = pnand %p2048_p3, %p2042_p0 }
  0x7e   :  { %990 = vmatpush2.bf16.msra.mxu1 %v1966_v12  ;;  %948 = vmatprep.subr.bf16.mxu0 %v1971_v15  ;;  %v1999_v41 = vld [vmem:[%s2714_s3 + $0xd8] sm:$0xff]   ;;  %v2003_v45 = vld [vmem:[%s2714_s3 + $0xc8] sm:$0xff]   ;;  %1773 = vpush %v1080_v49  ;;  %v170_v53 = vld [vmem:[%s2713_s2] sm:$0xf] }
  0x7f   :  { %991 = vmatprep.subr.bf16.mxu1 %v1974_v16  ;;  %v2000_v42 = vld [vmem:[%s2714_s3 + $0x98] sm:$0xff]   ;;  %v2004_v46 = vld [vmem:[%s2714_s3 + $0x88] sm:$0xff]   ;;  %v179_v55 = vrot.slane %v170_v53, %v178_v52  ;;  %v175_v56 = vrot.slane %v170_v53, %v174_v54 }
  0x81   :  { %949 = vmatpush2.bf16.msra.mxu0 %v1969_v17 }
  0x82   :  { %992 = vmatpush2.bf16.msra.mxu1 %v1972_v18  ;;  %1729 = vmatprep.subr.bf16.mxu0 %v1975_v19 }
  0x83   :  { %1751 = vmatprep.subr.bf16.mxu1 %v1991_v33 }
  0x84   :  { %951 = vmatmul.mubr.bf16.vlgmr.msra.gmra.mxu0 %v2368_v13  ;;  %v1981_v13 = vld [vmem:[%s2714_s3 + $0x60] sm:$0xff]  }
  0x85   :  { %994 = vmatmul.mubr.bf16.vlgmr.msra.gmra.mxu1 %v2372_v14  ;;  %1730 = vmatpush3.bf16.msra.mxu0 %v1976_v20  ;;  %v1982_v14 = vld [vmem:[%s2714_s3 + $0x20] sm:$0xff]  }
  0x86   :  { %1731 = vmatprep.subr.bf16.mxu0 %v1977_v21  ;;  %1752 = vmatpush3.bf16.msra.mxu1 %v1992_v34  ;;  %v186_v21 = vsub.s32 3, %v173_v51 }
  0x87   :  { %1753 = vmatprep.subr.bf16.mxu1 %v1993_v35 }
  0x89   :  { %1732 = vmatpush3.bf16.msra.mxu0 %v1978_v22  ;;  %v182_v22 = vsub.s32 2, %v173_v51 }
  0x8a   :  { %1733 = vmatprep.subr.bf16.mxu0 %v1979_v23  ;;  %1754 = vmatpush3.bf16.msra.mxu1 %v1994_v36  ;;  %v187_v23 = vrot.slane %v170_v53, %v186_v21 }
  0x8b   :  { %1755 = vmatprep.subr.bf16.mxu1 %v1995_v37 }
  0x8d   :  { %1734 = vmatpush3.bf16.msra.mxu0 %v1980_v24  ;;  %v183_v24 = vrot.slane %v170_v53, %v182_v22 }
  0x8e   :  { %1735 = vmatprep.subr.bf16.mxu0 %v1981_v13  ;;  %1756 = vmatpush3.bf16.msra.mxu1 %v1996_v38 }
  0x8f   :  { %1757 = vmatprep.subr.bf16.mxu1 %v1997_v39 }
  0x91   :  { %1736 = vmatpush3.bf16.msra.mxu0 %v1982_v14 }
  0x92   :  { %1737 = vmatprep.subr.bf16.mxu0 %v1983_v25  ;;  %1758 = vmatpush3.bf16.msra.mxu1 %v1998_v40 }
  0x93   :  { %1759 = vmatprep.subr.bf16.mxu1 %v1999_v41 }
  0x95   :  { %1738 = vmatpush3.bf16.msra.mxu0 %v1984_v26 }
  0x96   :  { %1739 = vmatprep.subr.bf16.mxu0 %v1985_v27  ;;  %1760 = vmatpush3.bf16.msra.mxu1 %v2000_v42 }
  0x97   :  { %1761 = vmatprep.subr.bf16.mxu1 %v2001_v43 }
  0x99   :  { %1740 = vmatpush3.bf16.msra.mxu0 %v1986_v28 }
  0x9a   :  { %1741 = vmatprep.subr.bf16.mxu0 %v1987_v29  ;;  %1762 = vmatpush3.bf16.msra.mxu1 %v2002_v44 }
  0x9b   :  { %1763 = vmatprep.subr.bf16.mxu1 %v2003_v45 }
  0x9d   :  { %1742 = vmatpush3.bf16.msra.mxu0 %v1988_v30 }
  0x9e   :  { %1743 = vmatprep.subr.bf16.mxu0 %v1989_v31  ;;  %1764 = vmatpush3.bf16.msra.mxu1 %v2004_v46 }
  0x9f   :  { %1765 = vmatprep.subr.bf16.mxu1 %v2005_v47 }
  0xa1   :  { %1744 = vmatpush3.bf16.msra.mxu0 %v1990_v32 }
  0xa2   :  { %1766 = vmatpush3.bf16.msra.mxu1 %v2006_v48 }
  0xaf   :  { %s1774_s2 = spop %1773 }
  0xb0   :  { %v1082_v49 = vstv %s1774_s2 }
 0x104   :  { %v866_v57 = vpop.f32.mrf.mxu0 }
 0x105   :  { %v909_v58 = vpop.f32.mrf.mxu1  ;;  %v867_v62 = vadd.f32 %v866_v57, %v175_v56 }
 0x106   :  { %v868_v59 = vpop.f32.mrf.mxu0 }
 0x107   :  { %v911_v60 = vpop.f32.mrf.mxu1  ;;  %v869_v61 = vadd.f32 %v868_v59, %v179_v55  ;;  %v910_v6 = vadd.f32 %v909_v58, %v867_v62 }
 0x108   :  { %v870_v63 = vpop.f32.mrf.mxu0 }
 0x109   :  { %v913_v0 = vpop.f32.mrf.mxu1  ;;  %v912_v1 = vadd.f32 %v911_v60, %v869_v61  ;;  %v871_v2 = vadd.f32 %v870_v63, %v175_v56 }
 0x10a   :  { %v872_v3 = vpop.f32.mrf.mxu0 }
 0x10b   :  { %v914_v4 = vadd.f32 %v913_v0, %v871_v2  ;;  %v873_v5 = vadd.f32 %v872_v3, %v179_v55  ;;  %v915_v11 = vpop.f32.mrf.mxu1  ;;  %2013 = vtanh.f32 %v912_v1 }
 0x10d   :  { %v916_v12 = vadd.f32 %v915_v11, %v873_v5  ;;  %2015 = vtanh.f32 %v914_v4 }
 0x10f   :  { %2017 = vtanh.f32 %v916_v12 }
 0x110   :  { %2019 = vtanh.f32 %v910_v6 }
 0x118   :  { %v2014_v15 = vpop.eup %2013 }
 0x11a   :  { %v2016_v16 = vpop.eup %2015 }
 0x11c   :  { %v2018_v17 = vpop.eup %2017 }
 0x11d   :  { %v2020_v18 = vpop.eup %2019  ;;  %v1013_v19 = vpack.c.bf16 %v2018_v17, %v2014_v15  ;;  %v2009_v17 = vld [vmem:[%s2716_s5 + $0x4] ss:$16 sps:$4 sm:$0xff]  }
 0x11e   :  { %v1012_v20 = vpack.c.bf16 %v2016_v16, %v2020_v18  ;;  %v2007_v16 = vld [vmem:[%s2716_s5] ss:$16 sps:$4 sm:$0xff]   ;;  %v2010_v18 = vld [vmem:[%s2716_s5 + $0x8] ss:$16 sps:$4 sm:$0xff]   ;;  %1424 = vmatprep.subr.bf16.mxu0 %v2009_v17 }
 0x11f   :  { %1307 = vmatprep.mubr.bf16.mxu0 %v1013_v19  ;;  %v2012_v19 = vld [vmem:[%s2716_s5 + $0xc] ss:$16 sps:$4 sm:$0xff]  }
 0x120   :  { %1308 = vmatmul.mubr.bf16.vlgmr.msra.gmra.mxu0 %v1012_v20  ;;  %v2085_v20 = vmov 0   ;;  %1467 = vmatprep.subr.bf16.mxu1 %v2012_v19 }
 0x121   :  { %1442 = vmatprep.mubr.bf16.mxu0 %v2085_v20  ;;  %1425 = vmatpush1.bf16.msra.mxu0 %v2007_v16 }
 0x144   :  { %v952_v13 = vpop.f32.mrf.mxu0 }
 0x145   :  { %v995_v14 = vpop.f32.mrf.mxu1  ;;  %v953_v28 = vadd.f32 %v952_v13, %v183_v24 }
 0x146   :  { %v954_v25 = vpop.f32.mrf.mxu0 }
 0x147   :  { %v997_v26 = vpop.f32.mrf.mxu1  ;;  %v955_v27 = vadd.f32 %v954_v25, %v187_v23  ;;  %v996_v36 = vadd.f32 %v995_v14, %v953_v28 }
 0x148   :  { %v956_v29 = vpop.f32.mrf.mxu0 }
 0x149   :  { %v999_v30 = vpop.f32.mrf.mxu1  ;;  %v998_v31 = vadd.f32 %v997_v26, %v955_v27  ;;  %v957_v32 = vadd.f32 %v956_v29, %v183_v24 }
 0x14a   :  { %v958_v33 = vpop.f32.mrf.mxu0 }
 0x14b   :  { %v1000_v34 = vadd.f32 %v999_v30, %v957_v32  ;;  %v959_v35 = vadd.f32 %v958_v33, %v187_v23  ;;  %v1001_v37 = vpop.f32.mrf.mxu1  ;;  %2021 = vtanh.f32 %v998_v31  ;;  %v2037_v31 = vld [vmem:[%s2711_s0 + $0x8] sm:$0xff] }
 0x14d   :  { %v1002_v38 = vadd.f32 %v1001_v37, %v959_v35  ;;  %2023 = vtanh.f32 %v1000_v34 }
 0x14f   :  { %2025 = vtanh.f32 %v1002_v38  ;;  %v2038_v38 = vld [vmem:[%s2711_s0 + $0x18] sm:$0xff] }
 0x150   :  { %2027 = vtanh.f32 %v996_v36 }
 0x158   :  { %v2022_v39 = vpop.eup %2021 }
 0x15a   :  { %v2024_v40 = vpop.eup %2023 }
 0x15c   :  { %v2026_v41 = vpop.eup %2025 }
 0x15d   :  { %v2028_v42 = vpop.eup %2027  ;;  %v1015_v43 = vpack.c.bf16 %v2026_v41, %v2022_v39 }
 0x15e   :  { %v1014_v44 = vpack.c.bf16 %v2024_v40, %v2028_v42 }
 0x15f   :  { %1348 = vmatprep.mubr.bf16.mxu1 %v1015_v43 }
 0x160   :  { %1349 = vmatmul.mubr.bf16.vlgmr.msra.gmra.mxu1 %v1014_v44 }
 0x161   :  { %1468 = vmatpush1.bf16.msra.mxu1 %v2010_v18  ;;  %1485 = vmatprep.mubr.bf16.mxu1 %v2085_v20 }
 0x1e0   :  { %v1745_v45 = vpop.f32.mrf.mxu0 }
 0x1e2   :  { %v1746_v46 = vpop.f32.mrf.mxu0 }
 0x1e3   :  { %v1747_v48 = vadd.f32 %v1746_v46, %v1745_v45  ;;  %v2040_v46 = vld [vmem:[%s2711_s0 + $0x38] sm:$0xff] }
 0x1e4   :  { %v1748_v47 = vpop.f32.mrf.mxu0 }
 0x1e5   :  { %v1310_v53 = vadd.f32 %v1747_v48, %v1082_v49 }
 0x1e6   :  { %v1749_v50 = vpop.f32.mrf.mxu0 }
 0x1e7   :  { %v1750_v54 = vadd.f32 %v1749_v50, %v1748_v47 }
 0x1e9   :  { %v1313_v59 = vadd.f32 %v1750_v54, %v1082_v49 }
 0x220   :  { %v1767_v51 = vpop.f32.mrf.mxu1 }
 0x222   :  { %v1768_v52 = vpop.f32.mrf.mxu1 }
 0x223   :  { %v1769_v55 = vadd.f32 %v1768_v52, %v1767_v51 }
 0x224   :  { %v1770_v56 = vpop.f32.mrf.mxu1 }
 0x225   :  { %v1351_v57 = vadd.f32 %v1769_v55, %v1310_v53 }
 0x226   :  { %v1771_v58 = vpop.f32.mrf.mxu1 }
 0x227   :  { %v1772_v60 = vadd.f32 %v1771_v58, %v1770_v56  ;;  %v1358_v61 = vsel %vm1357_vm0, %v1351_v57, -inf }
 0x228   :  { %1359 = vmax.xlane.f32.xlu0 %v1358_v61 }
 0x229   :  { %v1354_v62 = vadd.f32 %v1772_v60, %v1313_v59 }
 0x22b   :  { %v1361_v63 = vsel %vm1357_vm0, %v1354_v62, -inf }
 0x22c   :  { %1362 = vmax.xlane.f32.xlu0 %v1361_v63 }
 0x2b1   :  { %v1360_v0 = vpop.xlane.xlu0 %1359 }
 0x2b2   :  { %v1364_v1 = vsub.f32 %v1351_v57, %v1360_v0 }
 0x2b4   :  { %v1366_v2 = vmul.f32 1.442695, %v1364_v1 }
 0x2b5   :  { %v1363_v3 = vpop.xlane.xlu0 %1362 }
 0x2b6   :  { %2029 = vpow2.f32 %v1366_v2  ;;  %v1365_v4 = vsub.f32 %v1354_v62, %v1363_v3 }
 0x2b8   :  { %v1368_v5 = vmul.f32 1.442695, %v1365_v4 }
 0x2ba   :  { %2031 = vpow2.f32 %v1368_v5 }
 0x2c3   :  { %v2030_v6 = vpop.eup %2029 }
 0x2c4   :  { %v1370_v11 = vsel %vm1357_vm0, %v2030_v6, 0.0 }
 0x2c5   :  { %1371 = vadd.xlane.f32.xlu1 %v1370_v11 }
 0x2c7   :  { %v2032_v12 = vpop.eup %2031 }
 0x2c8   :  { %v1373_v15 = vsel %vm1357_vm0, %v2032_v12, 0.0 }
 0x2c9   :  { %1374 = vadd.xlane.f32.xlu1 %v1373_v15 }
 0x34e   :  { %v1372_v21 = vpop.xlane.xlu1 %1371 }
 0x34f   :  { %2033 = vrcp.f32 %v1372_v21 }
 0x352   :  { %v1375_v22 = vpop.xlane.xlu1 %1374 }
 0x353   :  { %2035 = vrcp.f32 %v1375_v22 }
 0x35c   :  { %v2034_v23 = vpop.eup %2033 }
 0x35d   :  { %v1377_v24 = vmul.f32 %v2034_v23, %v2030_v6 }
 0x35f   :  { %1380 = vst.msk [vmem:[#allocation5] sm:$0xff] %vm1357_vm0, %v1377_v24 }
 0x360   :  { %v2036_v13 = vpop.eup %2035 }
 0x361   :  { %v1379_v14 = vmul.f32 %v2036_v13, %v2032_v12 }
 0x363   :  { %v1382_v25 = vpack.c.bf16 %v1379_v14, %v1377_v24  ;;  %1381 = vst.msk [vmem:[#allocation5 + $0x8] sm:$0xff] %vm1357_vm0, %v1379_v14 }
 0x365   :  { %1727 = vmatmul.mubr.msk.bf16.vlgmr.msra.gmra.mxu0 %vm1357_vm0, %v1382_v25  ;;  %1728 = vmatmul.mubr.msk.bf16.vlgmr.msra.gmra.mxu1 %vm1357_vm0, %v1382_v25 }
 0x425   :  { %v1444_v26 = vpop.f32.mrf.mxu0  ;;  %v1487_v27 = vpop.f32.mrf.mxu1 }
 0x426   :  { %v1496_v30 = vmul.f32 %v1444_v26, %v2343_v7  ;;  %v1498_v35 = vmul.f32 %v1487_v27, %v2353_v9  ;;  %v2039_v7 = vld [vmem:[%s2711_s0 + $0x28] sm:$0xff] }
 0x427   :  { %v1446_v28 = vpop.f32.mrf.mxu0  ;;  %v1489_v29 = vpop.f32.mrf.mxu1 }
 0x428   :  { %v1497_v32 = vmul.f32 %v2037_v31, %v1446_v28  ;;  %v1499_v39 = vmul.f32 %v2038_v38, %v1489_v29 }
 0x429   :  { %v1448_v33 = vpop.f32.mrf.mxu0  ;;  %v1491_v34 = vpop.f32.mrf.mxu1 }
 0x42a   :  { %v1504_v36 = vadd.f32 %v1497_v32, %v1496_v30  ;;  %v1500_v41 = vmul.f32 %v1448_v33, %v2348_v8  ;;  %v1502_v45 = vmul.f32 %v1491_v34, %v2358_v10 }
 0x42b   :  { %v1450_v37 = vpop.f32.mrf.mxu0  ;;  %v1493_v43 = vpop.f32.mrf.mxu1 }
 0x42c   :  { %v1506_v40 = vadd.f32 %v1504_v36, %v1498_v35  ;;  %v1501_v42 = vmul.f32 %v2039_v7, %v1450_v37  ;;  %v1503_v47 = vmul.f32 %v2040_v46, %v1493_v43 }
 0x42e   :  { %v1508_v44 = vadd.f32 %v1506_v40, %v1499_v39  ;;  %v1505_v9 = vadd.f32 %v1501_v42, %v1500_v41 }
 0x430   :  { %v1507_v48 = vadd.f32 %v1505_v9, %v1502_v45  ;;  %1516 = vrot.lane.b32.xlu1 %v1508_v44, %s2086_s15  ;;  %1510 = vrot.lane.b32.xlu0 %v1508_v44, %s2087_s1 }
 0x432   :  { %v1509_v8 = vadd.f32 %v1507_v48, %v1503_v47 }
 0x433   :  { %2052 = shalt.err (!%p2049_p4)
}
 0x434   :  { %s2089_s19 = smov 128   ;;  %s2090_s20 = smov 8   ;;  %1512 = vrot.lane.b32.xlu1 %v1509_v8, %s2087_s1  ;;  %vm1528_vm1 = vcmask 261120  }
 0x435   :  { %1554 = dma.vmem_to_hbm [thread:$0]  %s1549_s17, 256, %s2718_s7, [#allocation6], %s2089_s19, %s2089_s19, %s2090_s20  }
 0x436   :  { %s2091_s22 = smov 96   ;;  %s2092_s23 = smov [#allocation3]  }
 0x437   :  { %1522 = vrot.lane.b32.xlu0 %v1508_v44, %s2091_s22  ;;  %s1536_s24 = sshll.u32 %s2092_s23, 4  ;;  %s1537_s24 = int_to_ptr.vmem [resolvable:$true] %s1536_s24 }
 0x438   :  { %1518 = vrot.lane.b32.xlu1 %v1509_v8, %s2086_s15  ;;  %s2061_s7 = scalar_lea.vmem %s1537_s24, 256  ;;  %p2066_p6 = scmp.lt.s32.totalorder %s1537_s24, %s1537_s24 }
 0x439   :  { %p2062_p5 = scmp.ne.s32.totalorder %s1537_s24, %s2061_s7  ;;  %p2067_p7 = scmp.lt.s32.totalorder %s2061_s7, %s2061_s7 }
 0x43b   :  { %p2068_p8 = por %p2067_p7, %p2066_p6 }
 0x43c   :  { %1524 = vrot.lane.b32.xlu1 %v1509_v8, %s2091_s22 }
 0x43d   :  { %p2069_p9 = pnand %p2068_p8, %p2062_p5 }
 0x4a2   :  { %v1517_v10 = vpop.permute.xlu1 %1516  ;;  %v1511_v49 = vpop.permute.xlu0 %1510 }
 0x4a3   :  { %v1514_v50 = vadd.f32 %v1511_v49, %v1508_v44 }
 0x4a5   :  { %v1520_v51 = vadd.f32 %v1517_v10, %v1514_v50 }
 0x4a6   :  { %v1513_v53 = vpop.permute.xlu1 %1512 }
 0x4a7   :  { %v1515_v56 = vadd.f32 %v1513_v53, %v1509_v8 }
 0x4a9   :  { %v1523_v52 = vpop.permute.xlu0 %1522 }
 0x4aa   :  { %v1526_v54 = vadd.f32 %v1523_v52, %v1520_v51  ;;  %v1519_v55 = vpop.permute.xlu1 %1518 }
 0x4ab   :  { %v1521_v57 = vadd.f32 %v1519_v55, %v1515_v56 }
 0x4ac   :  { %1529 = vst.msk [vmem:[#allocation3] sm:$0xff] %vm1528_vm1, %v1526_v54 }
 0x4ae   :  { %v1525_v58 = vpop.permute.xlu1 %1524 }
 0x4af   :  { %v1527_v59 = vadd.f32 %v1525_v58, %v1521_v57 }
 0x4b1   :  { %1530 = vst.msk [vmem:[#allocation3 + $0x8] sm:$0xff] %vm1528_vm1, %v1527_v59 }
 0x4b2   :  { %2072 = shalt.err (!%p2069_p9)
}
 0x4b3   :  { %1542 = dma.vmem_to_hbm [thread:$0]  %s1537_s24, 256, %s2717_s6, [#allocation4], %s2089_s19, %s2089_s19, %s2090_s20  }
 0x4b4   :  { %2081 = dma.done.wait [#allocation4], 256  }
 0x4b5   :  { %2082 = vsyncadd [#allocation4], 4294967040 }
 0x4b6   :  { %2083 = dma.done.wait [#allocation6], 256  }
 0x4b7   :  { %2084 = vsyncadd [#allocation6], 4294967040 }
 0x4b8   :  { %1561 = vsyncpa [#allocation4], 1 }
 0x4b9   :  { %1562 = vsyncpa [#allocation6], 1 }

</bundles_post_ra>
